<compile_context>
chip_gen: v6e
topology: v6e:2x2x1
jax: 0.10.0
libtpu: 0.0.40
codegen_flags: <defaults>
</compile_context>

<pallas_src>
import functools

import jax
import jax.numpy as jnp
from jax.experimental import pallas as pl
from jax.experimental.pallas import tpu as pltpu


NUM_PARTIALS = 2                     # partial-sum slots (== TensorCores/chip on v7x)
_VMEM_X_BUDGET = 8 * 1024 * 1024     # bytes for the double-buffered score tiles
_MAX_BLOCK_ROWS = 4096               # keep per-iteration f32 temporaries modest


def _hinge_kernel(x_ref, y_ref, o_ref, acc_ref, *,
                  total_b, tiles_per_slot, block_b, inv_b):
    c = pl.program_id(0)             # partial-sum slot axis ("parallel")
    t = pl.program_id(1)             # batch-tile reduction axis ("arbitrary")

    @pl.when(t == 0)
    def _():
        acc_ref[...] = jnp.zeros_like(acc_ref)

    s = x_ref[...].astype(jnp.float32)                 # (TB, C), f32 math in-kernel
    y = y_ref[...]                                     # (TB, 1) int32 labels
    tb, num_classes = s.shape

    col = jax.lax.broadcasted_iota(jnp.int32, (tb, num_classes), 1)
    is_target = col == y                               # (TB, C)

    # s.gather(1, y[:,None]) via masked lane-sum (labels assumed in [0, C)).
    s_y = jnp.sum(jnp.where(is_target, s, 0.0), axis=1, keepdims=True)           # (TB,1)
    # sum(aug * one_hot(argmax(aug))) == max(aug); delta fused into the select.
    max_aug = jnp.max(jnp.where(is_target, s, s + 1.0), axis=1, keepdims=True)   # (TB,1)
    per_row = max_aug - s_y

    # Zero rows past the true batch (padded tail tile / clamped duplicate tiles).
    tile_id = c * tiles_per_slot + t
    row = tile_id * block_b + jax.lax.broadcasted_iota(jnp.int32, (tb, 1), 0)
    per_row = jnp.where(row < total_b, per_row, 0.0)

    acc_ref[...] += jnp.sum(per_row, axis=0, keepdims=True)                       # (1,1)

    @pl.when(t == tiles_per_slot - 1)
    def _():
        o_ref[...] = jnp.broadcast_to(acc_ref[...] * inv_b, o_ref.shape)


def _pick_block_rows(batch, num_classes, itemsize):
    """Largest sublane-aligned batch tile whose double-buffered x tiles fit the budget."""
    c_pad = ((num_classes + 127) // 128) * 128
    rows = _VMEM_X_BUDGET // (2 * c_pad * itemsize)
    rows = min(rows, _MAX_BLOCK_ROWS, batch)
    if rows >= batch:
        return batch                              # single full-batch tile
    sub = 8 * max(1, 4 // itemsize)               # sublane granularity incl. dtype packing
    return max(sub, (rows // sub) * sub)


def multiclass_hinge_loss(x, y, *, num_partials=NUM_PARTIALS):
    """x: (B, C) scores (any float dtype), y: (B,) int labels -> scalar f32 loss."""
    batch, num_classes = x.shape
    y2 = y.astype(jnp.int32).reshape(batch, 1)

    tb = _pick_block_rows(batch, num_classes, x.dtype.itemsize)
    total_tiles = pl.cdiv(batch, tb)
    n_slots = max(1, min(num_partials, total_tiles))
    tiles_per_slot = pl.cdiv(total_tiles, n_slots)

    def in_map(c, t):
        # Clamp so slots with fewer real tiles re-read the last tile; those rows
        # are masked out inside the kernel, so they contribute 0.
        return (jnp.minimum(c * tiles_per_slot + t, total_tiles - 1), 0)

    kernel = functools.partial(
        _hinge_kernel, total_b=batch, tiles_per_slot=tiles_per_slot,
        block_b=tb, inv_b=1.0 / batch)

    out = pl.pallas_call(
        kernel,
        out_shape=jax.ShapeDtypeStruct((8 * n_slots, 128), jnp.float32),
        grid_spec=pltpu.PrefetchScalarGridSpec(
            num_scalar_prefetch=0,
            grid=(n_slots, tiles_per_slot),
            in_specs=[
                pl.BlockSpec((tb, num_classes), in_map),
                pl.BlockSpec((tb, 1), in_map),
            ],
            out_specs=pl.BlockSpec((8, 128), lambda c, t: (c, 0)),
            scratch_shapes=[pltpu.VMEM((1, 1), jnp.float32)],
        ),
        compiler_params=pltpu.CompilerParams(
            dimension_semantics=("parallel", "arbitrary"),
            vmem_limit_bytes=32 * 1024 * 1024,
        ),
    )(x, y2)

    # One (already 1/B-scaled) partial per slot lives at rows 0, 8, 16, ...
    return jnp.sum(out[0::8, 0])


def _reference_loss(x, y):
    """Plain-JAX reference mirroring the PyTorch module (smooth=False path)."""
    b, c = x.shape
    rng = jnp.arange(c)[None, :]
    delta = (y[:, None] != rng).astype(jnp.float32)
    s = x.astype(jnp.float32)
    s_y = jnp.take_along_axis(s, y[:, None], axis=1)
    aug = s + delta - s_y
    y_star = jnp.argmax(aug, axis=1)
    xi = (y_star[:, None] == rng).astype(jnp.float32)
    return jnp.sum(aug * xi) / b


if __name__ == "__main__":
    key = jax.random.PRNGKey(0)

    # Primary small case: a 2-D mini-batch of class scores, as the module expects.
    kx, ky, kx2, ky2 = jax.random.split(key, 4)
    B, C = 8, 32
    x = jax.random.normal(kx, (B, C), dtype=jnp.float32)
    y = jax.random.randint(ky, (B,), 0, C, dtype=jnp.int32)

    loss = multiclass_hinge_loss(x, y)
    jax.block_until_ready(loss)
    ref = _reference_loss(x, y)
    assert jnp.allclose(loss, ref, atol=1e-5, rtol=1e-5), (loss, ref)

    # Secondary check: exercises multi-tile streaming, the partial-sum slots and
    # the padded / clamped-duplicate-tile masking paths (still tiny in memory).
    B2, C2 = 8200, 16
    x2 = jax.random.normal(kx2, (B2, C2), dtype=jnp.float32)
    y2 = jax.random.randint(ky2, (B2,), 0, C2, dtype=jnp.int32)
    loss2 = multiclass_hinge_loss(x2, y2)
    jax.block_until_ready(loss2)
    ref2 = _reference_loss(x2, y2)
    assert jnp.allclose(loss2, ref2, atol=1e-4, rtol=1e-4), (loss2, ref2)

    print("KERNEL_OK")
</pallas_src>

<mosaic_0001>
module attributes {stable_mosaic.version = 11 : i64} {
  func.func @_hinge_kernel(%arg0: i32, %arg1: i32, %arg2: memref<8x32xf32, #tpu.memory_space<vmem>>, %arg3: memref<8x1xi32, #tpu.memory_space<vmem>>, %arg4: memref<8x128xf32, #tpu.memory_space<vmem>>, %arg5: memref<1x1xf32, #tpu.memory_space<vmem>>) attributes {dimension_semantics = [#tpu.dimension_semantics<parallel>, #tpu.dimension_semantics<arbitrary>], iteration_bounds = array<i64: 1, 1>, scalar_prefetch = 0 : i64, scratch_operands = 1 : i64, tpu.core_type = #tpu.core_type<tc>, window_params = [{transform_indices = @transform_0, window_bounds = array<i64: 8, 32>}, {transform_indices = @transform_1, window_bounds = array<i64: 8, 1>}, {transform_indices = @transform_2, window_bounds = array<i64: 8, 128>}]} {
    %c0_i32 = arith.constant 0 : i32
    %0 = arith.cmpi eq, %arg1, %c0_i32 : i32
    %1 = arith.extui %0 : i1 to i32
    %c0_i32_0 = arith.constant 0 : i32
    %2 = arith.cmpi ne, %1, %c0_i32_0 : i32
    scf.if %2 {
      %cst_16 = arith.constant 0.000000e+00 : f32
      %36 = vector.broadcast %cst_16 : f32 to vector<1x1xf32>
      %c0_17 = arith.constant 0 : index
      %c0_18 = arith.constant 0 : index
      %37 = vector.load %arg5[%c0_17, %c0_18] : memref<1x1xf32, #tpu.memory_space<vmem>>, vector<1x1xf32>
      tpu.vector_store %arg5[%c0_17, %c0_18], %36 {strides = array<i32>} : memref<1x1xf32, #tpu.memory_space<vmem>>, vector<1x1xf32>,
    } else {
    }
    %c0 = arith.constant 0 : index
    %c0_1 = arith.constant 0 : index
    %3 = vector.load %arg2[%c0, %c0_1] : memref<8x32xf32, #tpu.memory_space<vmem>>, vector<8x32xf32>
    %c0_2 = arith.constant 0 : index
    %c0_3 = arith.constant 0 : index
    %4 = vector.load %arg3[%c0_2, %c0_3] : memref<8x1xi32, #tpu.memory_space<vmem>>, vector<8x1xi32>
    %5 = tpu.iota {dimensions = array<i32: 1>} : vector<8x32xi32>
    %6 = vector.broadcast %4 : vector<8x1xi32> to vector<8x32xi32>
    %7 = arith.cmpi eq, %5, %6 : vector<8x32xi32>
    %cst = arith.constant 0.000000e+00 : f32
    %8 = vector.broadcast %cst : f32 to vector<8x32xf32>
    %9 = arith.select %7, %3, %8 : vector<8x32xi1>, vector<8x32xf32>
    %cst_4 = arith.constant dense<0.000000e+00> : vector<8xf32>
    %10 = vector.multi_reduction <add>, %9, %cst_4 [1] : vector<8x32xf32> to vector<8xf32>
    %11 = vector.shape_cast %10 : vector<8xf32> to vector<8x1xf32>
    %cst_5 = arith.constant 1.000000e+00 : f32
    %12 = vector.broadcast %cst_5 : f32 to vector<8x32xf32>
    %13 = arith.addf %3, %12 : vector<8x32xf32>
    %14 = arith.select %7, %3, %13 : vector<8x32xi1>, vector<8x32xf32>
    %cst_6 = arith.constant dense<0xFF800000> : vector<8xf32>
    %15 = vector.multi_reduction <maximumf>, %14, %cst_6 [1] : vector<8x32xf32> to vector<8xf32>
    %16 = vector.shape_cast %15 : vector<8xf32> to vector<8x1xf32>
    %17 = arith.subf %16, %11 : vector<8x1xf32>
    %c1_i32 = arith.constant 1 : i32
    %18 = arith.muli %arg0, %c1_i32 : i32
    %19 = arith.addi %18, %arg1 : i32
    %c8_i32 = arith.constant 8 : i32
    %20 = arith.muli %19, %c8_i32 : i32
    %21 = tpu.iota {dimensions = array<i32: 0>} : vector<8x1xi32>
    %22 = vector.broadcast %20 : i32 to vector<8x1xi32>
    %23 = arith.addi %22, %21 : vector<8x1xi32>
    %c8_i32_7 = arith.constant 8 : i32
    %24 = vector.broadcast %c8_i32_7 : i32 to vector<8x1xi32>
    %25 = arith.cmpi slt, %23, %24 : vector<8x1xi32>
    %cst_8 = arith.constant 0.000000e+00 : f32
    %26 = vector.broadcast %cst_8 : f32 to vector<8x1xf32>
    %27 = arith.select %25, %17, %26 : vector<8x1xi1>, vector<8x1xf32>
    %c0_9 = arith.constant 0 : index
    %c0_10 = arith.constant 0 : index
    %28 = vector.load %arg5[%c0_9, %c0_10] : memref<1x1xf32, #tpu.memory_space<vmem>>, vector<1x1xf32>
    %cst_11 = arith.constant dense<0.000000e+00> : vector<1xf32>
    %29 = vector.multi_reduction <add>, %27, %cst_11 [0] : vector<8x1xf32> to vector<1xf32>
    %30 = vector.shape_cast %29 : vector<1xf32> to vector<1x1xf32>
    %31 = arith.addf %28, %30 : vector<1x1xf32>
    %c0_12 = arith.constant 0 : index
    %c0_13 = arith.constant 0 : index
    %32 = vector.load %arg5[%c0_12, %c0_13] : memref<1x1xf32, #tpu.memory_space<vmem>>, vector<1x1xf32>
    tpu.vector_store %arg5[%c0_12, %c0_13], %31 {strides = array<i32>} : memref<1x1xf32, #tpu.memory_space<vmem>>, vector<1x1xf32>,
    %c0_i32_14 = arith.constant 0 : i32
    %33 = arith.cmpi eq, %arg1, %c0_i32_14 : i32
    %34 = arith.extui %33 : i1 to i32
    %c0_i32_15 = arith.constant 0 : i32
    %35 = arith.cmpi ne, %34, %c0_i32_15 : i32
    scf.if %35 {
      %c0_16 = arith.constant 0 : index
      %c0_17 = arith.constant 0 : index
      %36 = vector.load %arg5[%c0_16, %c0_17] : memref<1x1xf32, #tpu.memory_space<vmem>>, vector<1x1xf32>
      %cst_18 = arith.constant 1.250000e-01 : f32
      %37 = vector.broadcast %cst_18 : f32 to vector<1x1xf32>
      %38 = arith.mulf %36, %37 : vector<1x1xf32>
      %39 = vector.shape_cast %38 : vector<1x1xf32> to vector<1x1xf32>
      %40 = vector.broadcast %39 : vector<1x1xf32> to vector<8x128xf32>
      %c0_19 = arith.constant 0 : index
      %c0_20 = arith.constant 0 : index
      %41 = vector.load %arg4[%c0_19, %c0_20] : memref<8x128xf32, #tpu.memory_space<vmem>>, vector<8x128xf32>
      tpu.vector_store %arg4[%c0_19, %c0_20], %40 {strides = array<i32>} : memref<8x128xf32, #tpu.memory_space<vmem>>, vector<8x128xf32>,
    } else {
    }
    return
  }
  func.func @transform_0(%arg0: i32, %arg1: i32) -> (i32, i32) {
    %c1_i32 = arith.constant 1 : i32
    %0 = arith.muli %arg0, %c1_i32 : i32
    %1 = arith.addi %0, %arg1 : i32
    %c0_i32 = arith.constant 0 : i32
    %2 = arith.minsi %1, %c0_i32 : i32
    %c0_i32_0 = arith.constant 0 : i32
    %c0_i32_1 = arith.constant 0 : i32
    return %2, %c0_i32_0 : i32, i32
  }
  func.func @transform_1(%arg0: i32, %arg1: i32) -> (i32, i32) {
    %c1_i32 = arith.constant 1 : i32
    %0 = arith.muli %arg0, %c1_i32 : i32
    %1 = arith.addi %0, %arg1 : i32
    %c0_i32 = arith.constant 0 : i32
    %2 = arith.minsi %1, %c0_i32 : i32
    %c0_i32_0 = arith.constant 0 : i32
    %c0_i32_1 = arith.constant 0 : i32
    return %2, %c0_i32_0 : i32, i32
  }
  func.func @transform_2(%arg0: i32, %arg1: i32) -> (i32, i32) {
    %c0_i32 = arith.constant 0 : i32
    %c0_i32_0 = arith.constant 0 : i32
    return %arg0, %c0_i32 : i32, i32
  }
}

</mosaic_0001>

<bundles_post_ra>
// kernel: tpu_custom_call.1
= control target key start
LH: loop header
LB: loop body
LE: loop exit
PB: predicated region body
PF: predicated region fallthrough
CT: control target
= control target key end

     0   :  { %s204_s0 = inlined_call_operand.vmem [shape: f32[8,32], index: 0, kind: input, shape index: {}]   ;;  %s205_s1 = inlined_call_operand.vmem [shape: s32[8,1], index: 1, kind: input, shape index: {}]   ;;  %s206_s2 = inlined_call_operand.hbm [shape: f32[8,128], index: 2, kind: output, shape index: {}]  }
   0x1   :  { %v73_v0 = vld [vmem:[%s205_s1] sm:$0xff] }
   0x2   :  { %7 = vsyncpa [#allocation4], 0  ;;  %v177_v1 = vmov 0   ;;  %v74_v2 = vlaneseq  ;;  %v72_v3 = vld [vmem:[%s204_s0] sm:$0xff]  ;;  %vm81_vm0 = vcmask 261120   ;;  %vm70_vm2 = vcmask 0  }
   0x3   :  { %153 = vset.pattern.permute.xlu0 %v177_v1  ;;  %154 = vset.pattern.permute.xlu1 %v177_v1  ;;  %v85_v5 = vadd.f32 1.0, %v72_v3  ;;  %v178_v11 = vmov 0.0   ;;  %s179_s0 = smov [#allocation3]  }
   0x4   :  { %77 = vperm.xlu0 %153, %v73_v0   ;;  %v75_v4 = vand.u32 127, %v74_v2  ;;  %71 = vst.msk [vmem:[#allocation2] sm:$0x1] %vm70_vm2, %v178_v11  ;;  %v116_v23 = vshrl.u32 %v74_v2, 7  ;;  %s130_s1 = sshll.u32 %s179_s0, 4  ;;  %s131_s1 = int_to_ptr.vmem [resolvable:$true] %s130_s1 }
   0x5   :  { %s155_s13 = scalar_lea.vmem %s131_s1, 128  ;;  %p160_p1 = scmp.lt.s32.totalorder %s131_s1, %s131_s1 }
   0x6   :  { %v117_v24 = vsub.s32 0, %v116_v23  ;;  %p156_p0 = scmp.ne.s32.totalorder %s131_s1, %s155_s13  ;;  %p161_p2 = scmp.lt.s32.totalorder %s155_s13, %s155_s13 }
   0x8   :  { %p162_p3 = por %p161_p2, %p160_p1 }
   0xa   :  { %p163_p4 = pnand %p162_p3, %p156_p0 }
   0xb   :  { %v99_v20 = vld [vmem:[#allocation2] sm:$0x1] }
  0x7f   :  { %v78_v6 = vpop.permute.xlu0 %77 }
  0x80   :  { %vm79_vm1 = vcmp.eq.s32.totalorder %v75_v4, %v78_v6 }
  0x81   :  { %v86_v7 = vsel %vm79_vm1, %v72_v3, %v85_v5  ;;  %v80_v8 = vsel %vm79_vm1, %v72_v3, 0.0 }
  0x82   :  { %v87_v9 = vsel %vm81_vm0, %v86_v7, -inf  ;;  %v82_v10 = vsel %vm81_vm0, %v80_v8, 0.0 }
  0x83   :  { %88 = vmax.xlane.f32.xlu1 %v87_v9  ;;  %83 = vadd.xlane.f32.xlu0 %v82_v10 }
 0x10c   :  { %v89_v12 = vpop.xlane.xlu1 %88  ;;  %v84_v13 = vpop.xlane.xlu0 %83 }
 0x10d   :  { %v90_v14 = vsub.f32 %v89_v12, %v84_v13 }
 0x10f   :  { %v100_v15 = vrot.slane %v90_v14, 4 }
 0x111   :  { %v101_v16 = vadd.f32 %v100_v15, %v90_v14 }
 0x113   :  { %v102_v17 = vrot.slane %v101_v16, 2 }
 0x115   :  { %v103_v18 = vadd.f32 %v102_v17, %v101_v16 }
 0x117   :  { %v104_v19 = vrot.slane %v103_v18, 1 }
 0x119   :  { %v105_v21 = vadd.f32 %v104_v19, %v103_v18 }
 0x11b   :  { %v106_v22 = vadd.f32 %v105_v21, %v99_v20 }
 0x11d   :  { %108 = vst.msk [vmem:[#allocation2] sm:$0x1] %vm70_vm2, %v106_v22 }
 0x124   :  { %v112_v25 = vld [vmem:[#allocation2] sm:$0x1] }
 0x125   :  { %v113_v26 = vmul.f32 0.125, %v112_v25 }
 0x127   :  { %v118_v27 = vrot.slane %v113_v26, %v117_v24 }
 0x129   :  { %120 = vperm.xlu1 %154, %v118_v27  }
 0x1a4   :  { %v121_v28 = vpop.permute.xlu1 %120 }
 0x1a5   :  { %123 = vst [vmem:[#allocation3] sm:$0xff] %v121_v28 }
 0x1a6   :  { %166 = shalt.err (!%p163_p4)
}
 0x1a7   :  { %133 = dma.vmem_to_hbm [thread:$0]  %s131_s1, 128, %s206_s2, [#allocation4]  }
 0x1a8   :  { %175 = dma.done.wait [#allocation4], 128  }
 0x1a9   :  { %176 = vsyncadd [#allocation4], 4294967168 }
 0x1aa   :  { %137 = vsyncpa [#allocation4], 1 }

</bundles_post_ra>
